<compile_context>
chip_gen: v7x
topology: tpu7x:2x2x1
jax: 0.10.0
libtpu: 0.0.40
codegen_flags: <defaults>
</compile_context>

<pallas_src>
import functools
import math

import jax
import jax.numpy as jnp
from jax.experimental import pallas as pl
from jax.experimental.pallas import tpu as pltpu


def _round_up(x, m):
    return (x + m - 1) // m * m


# Cody-Waite split of pi: _PI_HI has few mantissa bits, so n*_PI_HI is exact
# for the small reduction indices n seen here (|freq*x| <= ~pi*num_radial).
_PI_HI = 3.140625
_PI_LO = math.pi - 3.140625
_INV_PI = 1.0 / math.pi

# Degree-9 odd Taylor coefficients for sin on [-pi/2, pi/2].
# Remainder bound (pi/2)^11 / 11! ~= 3.6e-6 -- well inside the 1e-4 budget.
_S3 = -1.0 / 6.0
_S5 = 1.0 / 120.0
_S7 = -1.0 / 5040.0
_S9 = 1.0 / 362880.0


def _fast_sin(arg):
    """sin(arg) via one pi range-reduction + degree-9 odd polynomial (VPU-only)."""
    n = jnp.round(arg * _INV_PI)                       # nearest multiple of pi
    r = (arg - n * _PI_HI) - n * _PI_LO                # r in [-pi/2, pi/2]
    half = n * 0.5                                     # sign = (-1)^n
    parity = half - jnp.floor(half)                    # 0.0 (even) or 0.5 (odd)
    sign = jnp.where(parity > 0.25, -1.0, 1.0)
    r2 = r * r
    poly = r * (1.0 + r2 * (_S3 + r2 * (_S5 + r2 * (_S7 + r2 * _S9))))
    return sign * poly


def _int_pow(x, n):
    """x**n for a small static integer n via trace-time square-and-multiply."""
    assert n >= 1
    result = None
    base = x
    while n:
        if n & 1:
            result = base if result is None else result * base
        n >>= 1
        if n:
            base = base * base
    return result


def _bessel_kernel(dist_ref, freq_ref, out_ref, *, p, a, b, c, inv_cutoff):
    """dist_ref: [1, TE], freq_ref: [R, 1], out_ref: [R, TE] (lane-dense)."""
    x = dist_ref[...] * inv_cutoff                     # [1, TE]

    # 1/x on the otherwise-idle EUP slot + one Newton step for f32 accuracy.
    recip = pl.reciprocal(x, approx=True)
    recip = recip * (2.0 - x * recip)

    # Horner-factored envelope: 1/x + x^(p-1) * (a + x*(b + c*x)).
    x_pm1 = _int_pow(x, p - 1)
    env = recip + x_pm1 * (a + x * (b + c * x))        # [1, TE]
    # TODO(synk): torch_geometric's Envelope additionally masks with (x < 1.0);
    # the provided module spec omits that mask, so it is omitted here too.

    # [R, 1] * [1, TE] -> [R, TE]; env broadcasts over the R sublanes.
    out_ref[...] = (env * _fast_sin(freq_ref[...] * x)).astype(out_ref.dtype)


def bessel_basis_forward(dist, freq, *, cutoff=5.0, envelope_exponent=5,
                         max_tile_e=65536, out_dtype=jnp.float32,
                         return_transposed=False):
    """dist: [E] float32 distances, freq: [R] float32 learnable frequencies.

    Returns [E, R] (matching BesselBasisLayer.forward), or the lane-dense
    [R, E] slab if return_transposed=True (fold the transpose into the
    downstream matmul by contracting over R to avoid an extra HBM pass).
    """
    E = dist.shape[0]
    R = freq.shape[0]

    p = envelope_exponent + 1
    a = -(p + 1) * (p + 2) / 2.0
    b = float(p * (p + 2))
    c = -p * (p + 1) / 2.0

    # Edge tile: as large as possible (amortizes the ~0.35 us/step pipeline
    # cost) while keeping >= 4 grid steps for large E (v7x megacore split)
    # and double-buffered VMEM well under v5e's 16 MiB scoped default.
    te = min(max_tile_e, _round_up(pl.cdiv(E, 4), 128))
    e_pad = _round_up(E, te)

    dist = dist.astype(jnp.float32)
    if e_pad != E:
        # Pad with 1.0 so 1/x on padded lanes stays finite; sliced off below.
        dist = jnp.pad(dist, (0, e_pad - E), constant_values=1.0)
    dist_row = dist.reshape(1, e_pad)
    freq_col = freq.astype(jnp.float32).reshape(R, 1)

    kernel = functools.partial(_bessel_kernel, p=p, a=a, b=b, c=c,
                               inv_cutoff=1.0 / cutoff)

    out_t = pl.pallas_call(
        kernel,
        out_shape=jax.ShapeDtypeStruct((R, e_pad), out_dtype),
        grid=(e_pad // te,),
        in_specs=[
            pl.BlockSpec((1, te), lambda i: (0, i)),   # dist tile (lane-dense)
            pl.BlockSpec((R, 1), lambda i: (0, 0)),    # freq (resident)
        ],
        out_specs=pl.BlockSpec((R, te), lambda i: (0, i)),
        compiler_params=pltpu.CompilerParams(
            dimension_semantics=("parallel",)),
        cost_estimate=pl.CostEstimate(
            flops=30 * e_pad * R + 12 * e_pad,
            transcendentals=e_pad,
            bytes_accessed=4 * e_pad + 4 * e_pad * R + 4 * R),
    )(dist_row, freq_col)

    if return_transposed:
        return out_t[:, :E]
    # Wrapper-side layout plumbing back to the module's [E, R] output.
    return out_t[:, :E].T


def _reference_forward(dist, freq, cutoff, envelope_exponent):
    p = envelope_exponent + 1
    a = -(p + 1) * (p + 2) / 2.0
    b = float(p * (p + 2))
    c = -p * (p + 1) / 2.0
    x = dist[:, None] / cutoff
    env = 1.0 / x + a * x ** (p - 1) + b * x ** p + c * x ** (p + 1)
    return env * jnp.sin(freq[None, :] * x)


if __name__ == "__main__":
    # Small shapes consistent with the module.
    num_radial = 6
    cutoff = 5.0
    envelope_exponent = 5
    num_dist = 37          # deliberately not a multiple of the 128-lane tile

    key = jax.random.PRNGKey(0)
    dist = jax.random.uniform(key, (num_dist,), jnp.float32,
                              minval=0.5, maxval=cutoff)
    # reset_parameters(): freq = pi * [1, 2, ..., num_radial]
    freq = jnp.pi * jnp.arange(1, num_radial + 1, dtype=jnp.float32)

    out = bessel_basis_forward(dist, freq, cutoff=cutoff,
                               envelope_exponent=envelope_exponent)
    out = jax.block_until_ready(out)

    ref = _reference_forward(dist, freq, cutoff, envelope_exponent)
    assert out.shape == (num_dist, num_radial)
    assert jnp.allclose(out, ref, atol=1e-4, rtol=1e-4), "mismatch vs JAX reference"

    print("KERNEL_OK")
</pallas_src>

<mosaic_0001>
module attributes {stable_mosaic.version = 11 : i64} {
  func.func @_bessel_kernel(%arg0: i32, %arg1: memref<1x128xf32, #tpu.memory_space<vmem>>, %arg2: memref<6x1xf32, #tpu.memory_space<vmem>>, %arg3: memref<6x128xf32, #tpu.memory_space<vmem>>) attributes {dimension_semantics = [#tpu.dimension_semantics<parallel>], iteration_bounds = array<i64: 1>, scalar_prefetch = 0 : i64, scratch_operands = 0 : i64, tpu.core_type = #tpu.core_type<tc>, window_params = [{transform_indices = @transform_0, window_bounds = array<i64: 1, 128>}, {pipeline_mode = #tpu.pipeline_mode<synchronous>, transform_indices = @transform_1, window_bounds = array<i64: 6, 1>}, {transform_indices = @transform_2, window_bounds = array<i64: 6, 128>}]} {
    %c0 = arith.constant 0 : index
    %c0_0 = arith.constant 0 : index
    %0 = vector.load %arg1[%c0, %c0_0] : memref<1x128xf32, #tpu.memory_space<vmem>>, vector<1x128xf32>
    %cst = arith.constant 2.000000e-01 : f32
    %1 = vector.broadcast %cst : f32 to vector<1x128xf32>
    %2 = arith.mulf %0, %1 : vector<1x128xf32>
    %3 = tpu.reciprocal %2 {approx = true} : vector<1x128xf32> -> vector<1x128xf32>
    %4 = arith.mulf %2, %3 : vector<1x128xf32>
    %cst_1 = arith.constant 2.000000e+00 : f32
    %5 = vector.broadcast %cst_1 : f32 to vector<1x128xf32>
    %6 = arith.subf %5, %4 : vector<1x128xf32>
    %7 = arith.mulf %3, %6 : vector<1x128xf32>
    %8 = arith.mulf %2, %2 : vector<1x128xf32>
    %9 = arith.mulf %8, %8 : vector<1x128xf32>
    %10 = arith.mulf %2, %9 : vector<1x128xf32>
    %cst_2 = arith.constant -2.100000e+01 : f32
    %11 = vector.broadcast %cst_2 : f32 to vector<1x128xf32>
    %12 = arith.mulf %11, %2 : vector<1x128xf32>
    %cst_3 = arith.constant 4.800000e+01 : f32
    %13 = vector.broadcast %cst_3 : f32 to vector<1x128xf32>
    %14 = arith.addf %13, %12 : vector<1x128xf32>
    %15 = arith.mulf %2, %14 : vector<1x128xf32>
    %cst_4 = arith.constant -2.800000e+01 : f32
    %16 = vector.broadcast %cst_4 : f32 to vector<1x128xf32>
    %17 = arith.addf %16, %15 : vector<1x128xf32>
    %18 = arith.mulf %10, %17 : vector<1x128xf32>
    %19 = arith.addf %7, %18 : vector<1x128xf32>
    %c0_5 = arith.constant 0 : index
    %c0_6 = arith.constant 0 : index
    %20 = vector.load %arg2[%c0_5, %c0_6] : memref<6x1xf32, #tpu.memory_space<vmem>>, vector<6x1xf32>
    %21 = vector.broadcast %20 : vector<6x1xf32> to vector<6x128xf32>
    %22 = vector.broadcast %2 : vector<1x128xf32> to vector<6x128xf32>
    %23 = arith.mulf %21, %22 : vector<6x128xf32>
    %cst_7 = arith.constant 0.318309873 : f32
    %24 = vector.broadcast %cst_7 : f32 to vector<6x128xf32>
    %25 = arith.mulf %23, %24 : vector<6x128xf32>
    %26 = math.roundeven %25 : vector<6x128xf32>
    %cst_8 = arith.constant 3.140625 : f32
    %27 = vector.broadcast %cst_8 : f32 to vector<6x128xf32>
    %28 = arith.mulf %26, %27 : vector<6x128xf32>
    %29 = arith.subf %23, %28 : vector<6x128xf32>
    %cst_9 = arith.constant 9.67653584E-4 : f32
    %30 = vector.broadcast %cst_9 : f32 to vector<6x128xf32>
    %31 = arith.mulf %26, %30 : vector<6x128xf32>
    %32 = arith.subf %29, %31 : vector<6x128xf32>
    %cst_10 = arith.constant 5.000000e-01 : f32
    %33 = vector.broadcast %cst_10 : f32 to vector<6x128xf32>
    %34 = arith.mulf %26, %33 : vector<6x128xf32>
    %35 = math.floor %34 : vector<6x128xf32>
    %36 = arith.subf %34, %35 : vector<6x128xf32>
    %cst_11 = arith.constant 2.500000e-01 : f32
    %37 = vector.broadcast %cst_11 : f32 to vector<6x128xf32>
    %38 = arith.cmpf ogt, %36, %37 : vector<6x128xf32>
    %cst_12 = arith.constant -1.000000e+00 : f32
    %cst_13 = arith.constant 1.000000e+00 : f32
    %39 = vector.broadcast %cst_12 : f32 to vector<6x128xf32>
    %40 = vector.broadcast %cst_13 : f32 to vector<6x128xf32>
    %41 = arith.select %38, %39, %40 : vector<6x128xi1>, vector<6x128xf32>
    %42 = arith.mulf %32, %32 : vector<6x128xf32>
    %cst_14 = arith.constant 2.75573188E-6 : f32
    %43 = vector.broadcast %cst_14 : f32 to vector<6x128xf32>
    %44 = arith.mulf %42, %43 : vector<6x128xf32>
    %cst_15 = arith.constant -1.98412701E-4 : f32
    %45 = vector.broadcast %cst_15 : f32 to vector<6x128xf32>
    %46 = arith.addf %45, %44 : vector<6x128xf32>
    %47 = arith.mulf %42, %46 : vector<6x128xf32>
    %cst_16 = arith.constant 0.00833333377 : f32
    %48 = vector.broadcast %cst_16 : f32 to vector<6x128xf32>
    %49 = arith.addf %48, %47 : vector<6x128xf32>
    %50 = arith.mulf %42, %49 : vector<6x128xf32>
    %cst_17 = arith.constant -0.166666672 : f32
    %51 = vector.broadcast %cst_17 : f32 to vector<6x128xf32>
    %52 = arith.addf %51, %50 : vector<6x128xf32>
    %53 = arith.mulf %42, %52 : vector<6x128xf32>
    %cst_18 = arith.constant 1.000000e+00 : f32
    %54 = vector.broadcast %cst_18 : f32 to vector<6x128xf32>
    %55 = arith.addf %54, %53 : vector<6x128xf32>
    %56 = arith.mulf %32, %55 : vector<6x128xf32>
    %57 = arith.mulf %41, %56 : vector<6x128xf32>
    %58 = vector.broadcast %19 : vector<1x128xf32> to vector<6x128xf32>
    %59 = arith.mulf %58, %57 : vector<6x128xf32>
    %c0_19 = arith.constant 0 : index
    %c0_20 = arith.constant 0 : index
    %60 = vector.load %arg3[%c0_19, %c0_20] : memref<6x128xf32, #tpu.memory_space<vmem>>, vector<6x128xf32>
    tpu.vector_store %arg3[%c0_19, %c0_20], %59 {strides = array<i32>} : memref<6x128xf32, #tpu.memory_space<vmem>>, vector<6x128xf32>,
    return
  }
  func.func @transform_0(%arg0: i32) -> (i32, i32) {
    %c0_i32 = arith.constant 0 : i32
    %c0_i32_0 = arith.constant 0 : i32
    return %c0_i32, %arg0 : i32, i32
  }
  func.func @transform_1(%arg0: i32) -> (i32, i32) {
    %c0_i32 = arith.constant 0 : i32
    %c0_i32_0 = arith.constant 0 : i32
    %c0_i32_1 = arith.constant 0 : i32
    return %c0_i32, %c0_i32_0 : i32, i32
  }
  func.func @transform_2(%arg0: i32) -> (i32, i32) {
    %c0_i32 = arith.constant 0 : i32
    %c0_i32_0 = arith.constant 0 : i32
    return %c0_i32, %arg0 : i32, i32
  }
}

</mosaic_0001>

<bundles_post_ra>
// kernel: tpu_custom_call.1
= control target key start
LH: loop header
LB: loop body
LE: loop exit
PB: predicated region body
PF: predicated region fallthrough
CT: control target
= control target key end

     0   :  { %v115_v1 = vmov 0   ;;  %s151_s0 = inlined_call_operand.vmem [shape: f32[1,128], index: 0, kind: input, shape index: {}]   ;;  %s152_s1 = inlined_call_operand.vmem [shape: f32[6,1], index: 1, kind: input, shape index: {}]   ;;  %s153_s2 = inlined_call_operand.hbm [shape: f32[6,128], index: 2, kind: output, shape index: {}]  }
   0x1   :  { %v27_v0 = vld [vmem:[%s152_s1] sm:$0x3f]  ;;  %88 = vset.pattern.permute.xlu0 %v115_v1 }
   0x2   :  { %7 = vsyncpa [#allocation3], 0  ;;  %30 = vperm.xlu0 %88, %v27_v0   ;;  %v34_v2 = vlaneseq  ;;  %v12_v4 = vld [vmem:[%s151_s0] sm:$0x1]  ;;  %v116_v43 = vmov 1.0   ;;  %s117_s0 = smov [#allocation2]  }
   0x3   :  { %v13_v6 = vmul.f32 0.2, %v12_v4  ;;  %s76_s1 = sshll.u32 %s117_s0, 4  ;;  %s77_s1 = int_to_ptr.vmem [resolvable:$true] %s76_s1 }
   0x4   :  { %v35_v3 = vshrl.u32 %v34_v2, 7  ;;  %s91_s13 = scalar_lea.vmem %s77_s1, 128  ;;  %p96_p1 = scmp.lt.s32.totalorder %s77_s1, %s77_s1 }
   0x5   :  { %89 = vrcp.f32 %v13_v6  ;;  %v21_v13 = vmul.f32 -21.0, %v13_v6  ;;  %v18_v17 = vmul.f32 %v13_v6, %v13_v6  ;;  %p92_p0 = scmp.ne.s32.totalorder %s77_s1, %s91_s13  ;;  %p97_p2 = scmp.lt.s32.totalorder %s91_s13, %s91_s13 }
   0x6   :  { %v36_v5 = vsub.s32 0, %v35_v3 }
   0x7   :  { %v22_v18 = vadd.f32 48.0, %v21_v13  ;;  %v19_v23 = vmul.f32 %v18_v17, %v18_v17  ;;  %p98_p3 = por %p97_p2, %p96_p1 }
   0x8   :  { %v37_v7 = vrot.slane %v13_v6, %v36_v5 }
   0x9   :  { %v23_v24 = vmul.f32 %v22_v18, %v13_v6  ;;  %v20_v28 = vmul.f32 %v19_v23, %v13_v6  ;;  %p99_p4 = pnand %p98_p3, %p92_p0 }
   0xb   :  { %v24_v29 = vadd.f32 -28.0, %v23_v24 }
   0xd   :  { %v25_v34 = vmul.f32 %v24_v29, %v20_v28 }
   0xf   :  { %v90_v19 = vpop.eup %89 }
  0x10   :  { %v15_v22 = vmul.f32 %v90_v19, %v13_v6 }
  0x12   :  { %v16_v27 = vsub.f32 2.0, %v15_v22 }
  0x14   :  { %v17_v33 = vmul.f32 %v90_v19, %v16_v27 }
  0x16   :  { %v26_v38 = vadd.f32 %v25_v34, %v17_v33 }
  0x18   :  { %v66_v42 = vrot.slane %v26_v38, %v36_v5 }
  0x81   :  { %v31_v8 = vpop.permute.xlu0 %30 }
  0x82   :  { %v39_v9 = vmul.f32 %v37_v7, %v31_v8 }
  0x84   :  { %v40_v10 = vmul.f32 0.31830987, %v39_v9 }
  0x86   :  { %v84_v11 = vround.rtne.f32 %v40_v10 }
  0x88   :  { %v42_v12 = vmul.f32 3.140625, %v84_v11  ;;  %v44_v15 = vmul.f32 0.0009676536, %v84_v11  ;;  %v46_v25 = vmul.f32 0.5, %v84_v11 }
  0x8a   :  { %v43_v14 = vsub.f32 %v39_v9, %v42_v12  ;;  %v47_v31 = vfloor.f32 %v46_v25 }
  0x8c   :  { %v45_v16 = vsub.f32 %v43_v14, %v44_v15  ;;  %v48_v36 = vsub.f32 %v46_v25, %v47_v31 }
  0x8e   :  { %v51_v20 = vmul.f32 %v45_v16, %v45_v16  ;;  %vm49_vm0 = vcmp.gt.f32.partialorder %v48_v36, 0.25 }
  0x8f   :  { %v50_v44 = vsel %vm49_vm0, -1.0, %v116_v43 }
  0x90   :  { %v52_v21 = vmul.f32 2.7557319e-06, %v51_v20 }
  0x92   :  { %v53_v26 = vadd.f32 -0.0001984127, %v52_v21 }
  0x94   :  { %v54_v30 = vmul.f32 %v53_v26, %v51_v20 }
  0x96   :  { %v55_v32 = vadd.f32 0.008333334, %v54_v30 }
  0x98   :  { %v56_v35 = vmul.f32 %v55_v32, %v51_v20 }
  0x9a   :  { %v57_v37 = vadd.f32 -0.16666667, %v56_v35 }
  0x9c   :  { %v58_v39 = vmul.f32 %v57_v37, %v51_v20 }
  0x9e   :  { %v59_v40 = vadd.f32 1.0, %v58_v39 }
  0xa0   :  { %v60_v41 = vmul.f32 %v59_v40, %v45_v16 }
  0xa2   :  { %v61_v45 = vmul.f32 %v60_v41, %v50_v44 }
  0xa4   :  { %v68_v46 = vmul.f32 %v66_v42, %v61_v45 }
  0xa6   :  { %69 = vst [vmem:[#allocation2] sm:$0x3f] %v68_v46 }
  0xa7   :  { %102 = shalt.err (!%p99_p4)
}
  0xa8   :  { %s103_s16 = scalar_lea.hbm %s153_s2, 128 }
  0xa9   :  { %p104_p5 = scmp.ne.s32.totalorder %s153_s2, %s103_s16  ;;  %p107_p6 = scmp.lt.u32.totalorder %s103_s16, %s153_s2 }
  0xab   :  { %p109_p7 = pnand %p107_p6, %p104_p5 }
  0xad   :  { %112 = shalt.err (!%p109_p7)
}
  0xae   :  { %79 = dma.vmem_to_hbm [thread:$0]  %s77_s1, 128, %s153_s2, [#allocation3]  }
  0xaf   :  { %113 = dma.done.wait [#allocation3], 128  }
  0xb0   :  { %114 = vsyncadd [#allocation3], 4294967168 }
  0xb1   :  { %83 = vsyncpa [#allocation3], 1 }

</bundles_post_ra>
